<compile_context>
chip_gen: v7x
topology: tpu7x:2x2x1
jax: 0.10.0
libtpu: 0.0.40
codegen_flags: <defaults>
</compile_context>

<pallas_src>
import functools

import jax
import jax.numpy as jnp
from jax.experimental import pallas as pl
from jax.experimental.pallas import tpu as pltpu

LANE = 128
SUBLANE = 8


def _round_up(x, m):
    return (x + m - 1) // m * m


def _pad2(a, rows, cols):
    r, c = a.shape
    return jnp.pad(a, ((0, rows - r), (0, cols - c)))


def _fused_mlp_kernel(x_ref, wf_ref, bf_ref, wm_ref, bm_ref, wl_ref, bl_ref,
                      o_ref, h_ref, *, num_mid):
    """Whole-MLP forward on one (tm, .) batch tile; activations stay in VMEM.

    x_ref : (tm, Kin)   bf16     wf_ref: (Kin, H)   bf16    bf_ref: (1, H)    f32
    wm_ref: (Lm, H, H)  bf16     bm_ref: (Lm, 1, H) f32
    wl_ref: (H, Nout)   bf16     bl_ref: (1, Nout)  f32
    o_ref : (tm, Nout)  f32      h_ref : (tm, H)    bf16 VMEM scratch
    All feature dims are lane-dense (multiples of 128); padded lanes are zero.
    """
    # First layer + ReLU (bf16 MXU operands, f32 accumulate / bias / ReLU).
    y = jnp.dot(x_ref[...], wf_ref[...], preferred_element_type=jnp.float32)
    y = jnp.maximum(y + bf_ref[...], 0.0)
    h_ref[...] = y.astype(h_ref.dtype)

    # Hidden layers + ReLU.  num_mid is a static Python int -> static unroll.
    # The activation is staged through the explicit VMEM scratch (bounds live
    # ranges; any spill is a clean streamed vst/vld instead of regalloc chaos).
    for l in range(num_mid):
        y = jnp.dot(h_ref[...], wm_ref[l], preferred_element_type=jnp.float32)
        y = jnp.maximum(y + bm_ref[l], 0.0)
        h_ref[...] = y.astype(h_ref.dtype)

    # Last layer (no ReLU): f32 writeback at the true (padded) output width.
    y = jnp.dot(h_ref[...], wl_ref[...], preferred_element_type=jnp.float32)
    o_ref[...] = (y + bl_ref[...]).astype(o_ref.dtype)


def _vmem_limit_bytes():
    # v7x: 64 MiB VMEM per TensorCore; v5e/v6e: 128 MiB.  Leave headroom for
    # compiler-internal scratch and the double-buffered activation tiles.
    try:
        cap = pltpu.get_tpu_info().vmem_capacity_bytes
    except Exception:
        cap = 64 * 1024 * 1024  # conservative fallback: assume v7x per-TC VMEM
    return min(int(cap) * 3 // 4, 100 * 1024 * 1024)


def mlp_forward(params, x, *, single_buffer_weights=True):
    """first_layer -> ReLU -> (mid -> ReLU)* -> last_layer, one pallas_call."""
    M, input_dim = x.shape
    hidden_dim = params[0][0].shape[1]
    output_dim = params[-1][0].shape[1]
    num_mid = len(params) - 2
    assert num_mid >= 0

    # Per-layer lane-dense padding (multiples of 128); asymmetric dims are
    # padded independently so small input/output layers don't inherit the
    # hidden width.
    # TODO(synk): once true feature dims reach >=256, pad K/N to 256-multiples
    # on v6e/v7x (256x256 MXU); 128 is full width on v5e and for small dims.
    kin_pad = _round_up(input_dim, LANE)
    h_pad = _round_up(hidden_dim, LANE)
    nout_pad = _round_up(output_dim, LANE)

    # Pack / pad parameters.  Zero-padded rows/cols + zero bias keep padded
    # lanes exactly zero through every layer, so valid columns are unaffected.
    wf = _pad2(params[0][0], kin_pad, h_pad).astype(jnp.bfloat16)
    bf = _pad2(params[0][1][None, :], 1, h_pad)
    wl = _pad2(params[-1][0], h_pad, nout_pad).astype(jnp.bfloat16)
    bl = _pad2(params[-1][1][None, :], 1, nout_pad)
    if num_mid > 0:
        wm = jnp.stack([_pad2(w, h_pad, h_pad) for w, _ in params[1:-1]])
        bm = jnp.stack([_pad2(b[None, :], 1, h_pad) for _, b in params[1:-1]])
    else:  # dummy, never read: the kernel's static loop has 0 iterations
        wm = jnp.zeros((1, h_pad, h_pad), jnp.float32)
        bm = jnp.zeros((1, 1, h_pad), jnp.float32)
    wm = wm.astype(jnp.bfloat16)
    num_mid_eff = max(num_mid, 1)

    # Batch tiling: up to 512-row tiles (mem-bound roofline), multiple of 16
    # (bf16 sublane packing).  If the whole batch fits in one tile but can be
    # split, split it so both v7x TensorCores get a tile (harmless on 1-TC
    # chips, where it only adds one ~0.35us grid step).
    if M <= 2 * SUBLANE:
        tm = _round_up(M, SUBLANE)
    else:
        tm = min(512, _round_up(M, 16))
        if _round_up(M, tm) == tm and tm >= 32:
            tm = _round_up(tm // 2, 16)
    m_pad = _round_up(M, tm)
    grid = (m_pad // tm,)

    # bf16 activations into the kernel: the zero-pad is fused with the cast
    # (the kernel fed f32 x straight into a bf16 MXU cast anyway), halving the
    # only per-grid-step HBM input traffic.  allow_input_fusion lets XLA
    # compute this pad/cast directly into the kernel operand instead of a
    # separate materialized HBM round-trip.
    x_pad = jnp.pad(x.astype(jnp.bfloat16),
                    ((0, m_pad - M), (0, kin_pad - input_dim)))

    flops = 2 * m_pad * (kin_pad * h_pad + num_mid * h_pad * h_pad
                         + h_pad * nout_pad)
    bytes_accessed = (x_pad.size * 2 + wf.size * 2 + wl.size * 2
                      + wm.size * 2 + bm.size * 4
                      + bf.size * 4 + bl.size * 4 + m_pad * nout_pad * 4)

    # Weights / biases: full block + constant index_map -> resident in VMEM
    # across all batch-grid steps.  Single-buffered: a second pipeline buffer
    # for an operand that never changes is pure VMEM waste.
    resident = {"pipeline_mode": pl.Buffered(1)} if single_buffer_weights else {}
    in_specs = [
        pl.BlockSpec((tm, kin_pad), lambda i: (i, 0)),
        pl.BlockSpec((kin_pad, h_pad), lambda i: (0, 0), **resident),
        pl.BlockSpec((1, h_pad), lambda i: (0, 0), **resident),
        pl.BlockSpec((num_mid_eff, h_pad, h_pad), lambda i: (0, 0, 0), **resident),
        pl.BlockSpec((num_mid_eff, 1, h_pad), lambda i: (0, 0, 0), **resident),
        pl.BlockSpec((h_pad, nout_pad), lambda i: (0, 0), **resident),
        pl.BlockSpec((1, nout_pad), lambda i: (0, 0), **resident),
    ]

    kernel = functools.partial(_fused_mlp_kernel, num_mid=num_mid)
    out_pad = pl.pallas_call(
        kernel,
        out_shape=jax.ShapeDtypeStruct((m_pad, nout_pad), jnp.float32),
        grid=grid,
        in_specs=in_specs,
        out_specs=pl.BlockSpec((tm, nout_pad), lambda i: (i, 0)),
        scratch_shapes=[pltpu.VMEM((tm, h_pad), jnp.bfloat16)],
        compiler_params=pltpu.CompilerParams(
            dimension_semantics=("parallel",),
            vmem_limit_bytes=_vmem_limit_bytes(),
            allow_input_fusion=[True] + [False] * 6,
        ),
        cost_estimate=pl.CostEstimate(
            flops=flops, transcendentals=0, bytes_accessed=bytes_accessed),
    )(x_pad, wf, bf, wm, bm, wl, bl)

    return out_pad[:M, :output_dim]


def init_mlp_params(key, num_hidden_layers, hidden_dim, input_dim, output_dim):
    """Mimics nn.Linear default init (uniform +/- 1/sqrt(fan_in)).

    Weights stored pre-transposed as (in_features, out_features).
    """
    dims = [(input_dim, hidden_dim)]
    dims += [(hidden_dim, hidden_dim)] * (num_hidden_layers - 1)
    dims += [(hidden_dim, output_dim)]
    params = []
    for fan_in, fan_out in dims:
        key, kw, kb = jax.random.split(key, 3)
        bound = 1.0 / (fan_in ** 0.5)
        w_t = jax.random.uniform(kw, (fan_in, fan_out), jnp.float32, -bound, bound)
        b = jax.random.uniform(kb, (fan_out,), jnp.float32, -bound, bound)
        params.append((w_t, b))
    return params


def mlp_forward_ref_bf16(params, x):
    """Pure-JAX reference with the kernel's exact numerics (bf16 MXU, f32 acc)."""
    n = len(params)
    h = x.astype(jnp.float32)
    for i, (w_t, b) in enumerate(params):
        h = jnp.dot(h.astype(jnp.bfloat16), w_t.astype(jnp.bfloat16),
                    preferred_element_type=jnp.float32) + b
        if i != n - 1:
            h = jnp.maximum(h, 0.0)
    return h


def mlp_forward_ref_f32(params, x):
    """Full-precision reference matching the PyTorch module semantics."""
    # Precision contract: the kernel uses bf16 MXU operands with f32
    # accumulation/bias/ReLU, so it matches this f32 reference only loosely.
    n = len(params)
    h = x
    for i, (w_t, b) in enumerate(params):
        h = h @ w_t + b
        if i != n - 1:
            h = jnp.maximum(h, 0.0)
    return h


if __name__ == "__main__":
    num_hidden_layers = 3
    hidden_dim = 32
    input_dim = 16
    output_dim = 8
    batch = 8

    key = jax.random.PRNGKey(0)
    key, kx = jax.random.split(key)
    x = jax.random.normal(kx, (batch, input_dim), jnp.float32)

    params = init_mlp_params(key, num_hidden_layers, hidden_dim, input_dim,
                             output_dim)

    fwd = jax.jit(mlp_forward, static_argnames=("single_buffer_weights",))
    try:
        out = jax.block_until_ready(fwd(params, x, single_buffer_weights=True))
    except Exception:
        # Fallback if this JAX build rejects pipeline_mode=pl.Buffered(1) on
        # the resident weight specs: let them double-buffer instead.
        out = jax.block_until_ready(fwd(params, x, single_buffer_weights=False))
    assert out.shape == (batch, output_dim)

    # Tight check against a reference with identical arithmetic (bf16 operands,
    # f32 accumulation, f32 bias/ReLU).
    ref_bf16 = mlp_forward_ref_bf16(params, x)
    assert jnp.allclose(out, ref_bf16, atol=1e-3, rtol=1e-3), (
        float(jnp.max(jnp.abs(out - ref_bf16))))

    # Loose sanity check against the full-f32 PyTorch-equivalent forward.
    ref_f32 = mlp_forward_ref_f32(params, x)
    assert jnp.allclose(out, ref_f32, atol=2.5e-1, rtol=5e-2), (
        float(jnp.max(jnp.abs(out - ref_f32))))

    print("KERNEL_OK")
</pallas_src>

<mosaic_0001>
module attributes {stable_mosaic.version = 11 : i64} {
  func.func @_fused_mlp_kernel(%arg0: i32, %arg1: memref<8x128xbf16, #tpu.memory_space<vmem>>, %arg2: memref<128x128xbf16, #tpu.memory_space<vmem>>, %arg3: memref<1x128xf32, #tpu.memory_space<vmem>>, %arg4: memref<2x128x128xbf16, #tpu.memory_space<vmem>>, %arg5: memref<2x1x128xf32, #tpu.memory_space<vmem>>, %arg6: memref<128x128xbf16, #tpu.memory_space<vmem>>, %arg7: memref<1x128xf32, #tpu.memory_space<vmem>>, %arg8: memref<8x128xf32, #tpu.memory_space<vmem>>, %arg9: memref<8x128xbf16, #tpu.memory_space<vmem>>) attributes {dimension_semantics = [#tpu.dimension_semantics<parallel>], iteration_bounds = array<i64: 1>, scalar_prefetch = 0 : i64, scratch_operands = 1 : i64, tpu.core_type = #tpu.core_type<tc>, window_params = [{transform_indices = @transform_0, window_bounds = array<i64: 8, 128>}, {pipeline_mode = #tpu.pipeline_mode<synchronous>, transform_indices = @transform_1, window_bounds = array<i64: 128, 128>}, {pipeline_mode = #tpu.pipeline_mode<synchronous>, transform_indices = @transform_2, window_bounds = array<i64: 1, 128>}, {pipeline_mode = #tpu.pipeline_mode<synchronous>, transform_indices = @transform_3, window_bounds = array<i64: 2, 128, 128>}, {pipeline_mode = #tpu.pipeline_mode<synchronous>, transform_indices = @transform_4, window_bounds = array<i64: 2, 1, 128>}, {pipeline_mode = #tpu.pipeline_mode<synchronous>, transform_indices = @transform_5, window_bounds = array<i64: 128, 128>}, {pipeline_mode = #tpu.pipeline_mode<synchronous>, transform_indices = @transform_6, window_bounds = array<i64: 1, 128>}, {transform_indices = @transform_7, window_bounds = array<i64: 8, 128>}]} {
    %c0 = arith.constant 0 : index
    %c0_0 = arith.constant 0 : index
    %0 = vector.load %arg1[%c0, %c0_0] : memref<8x128xbf16, #tpu.memory_space<vmem>>, vector<8x128xbf16>
    %c0_1 = arith.constant 0 : index
    %c0_2 = arith.constant 0 : index
    %1 = vector.load %arg2[%c0_1, %c0_2] : memref<128x128xbf16, #tpu.memory_space<vmem>>, vector<128x128xbf16>
    %cst = arith.constant dense<0.000000e+00> : vector<8x128xf32>
    %2 = tpu.matmul %0, %1, %cst {dimension_numbers = #tpu.dot_dimension_numbers<[1], [0], [0], [1], [0, 0, 1, 1], [], []>} : vector<8x128xbf16>, vector<128x128xbf16>, vector<8x128xf32> -> vector<8x128xf32>
    %c0_3 = arith.constant 0 : index
    %c0_4 = arith.constant 0 : index
    %3 = vector.load %arg3[%c0_3, %c0_4] : memref<1x128xf32, #tpu.memory_space<vmem>>, vector<1x128xf32>
    %4 = vector.broadcast %3 : vector<1x128xf32> to vector<8x128xf32>
    %5 = arith.addf %2, %4 : vector<8x128xf32>
    %cst_5 = arith.constant 0.000000e+00 : f32
    %6 = vector.broadcast %cst_5 : f32 to vector<8x128xf32>
    %7 = arith.maximumf %5, %6 : vector<8x128xf32>
    %8 = arith.truncf %7 : vector<8x128xf32> to vector<8x128xbf16>
    %c0_6 = arith.constant 0 : index
    %c0_7 = arith.constant 0 : index
    %9 = vector.load %arg9[%c0_6, %c0_7] : memref<8x128xbf16, #tpu.memory_space<vmem>>, vector<8x128xbf16>
    tpu.vector_store %arg9[%c0_6, %c0_7], %8 {strides = array<i32>} : memref<8x128xbf16, #tpu.memory_space<vmem>>, vector<8x128xbf16>,
    %c0_8 = arith.constant 0 : index
    %c0_9 = arith.constant 0 : index
    %10 = vector.load %arg9[%c0_8, %c0_9] : memref<8x128xbf16, #tpu.memory_space<vmem>>, vector<8x128xbf16>
    %c0_10 = arith.constant 0 : index
    %c0_11 = arith.constant 0 : index
    %c0_12 = arith.constant 0 : index
    %11 = vector.load %arg4[%c0_10, %c0_11, %c0_12] : memref<2x128x128xbf16, #tpu.memory_space<vmem>>, vector<1x128x128xbf16>
    %12 = vector.shape_cast %11 : vector<1x128x128xbf16> to vector<128x128xbf16>
    %cst_13 = arith.constant dense<0.000000e+00> : vector<8x128xf32>
    %13 = tpu.matmul %10, %12, %cst_13 {dimension_numbers = #tpu.dot_dimension_numbers<[1], [0], [0], [1], [0, 0, 1, 1], [], []>} : vector<8x128xbf16>, vector<128x128xbf16>, vector<8x128xf32> -> vector<8x128xf32>
    %c0_14 = arith.constant 0 : index
    %c0_15 = arith.constant 0 : index
    %c0_16 = arith.constant 0 : index
    %14 = vector.load %arg5[%c0_14, %c0_15, %c0_16] : memref<2x1x128xf32, #tpu.memory_space<vmem>>, vector<1x1x128xf32>
    %15 = vector.shape_cast %14 : vector<1x1x128xf32> to vector<1x128xf32>
    %16 = vector.broadcast %15 : vector<1x128xf32> to vector<8x128xf32>
    %17 = arith.addf %13, %16 : vector<8x128xf32>
    %cst_17 = arith.constant 0.000000e+00 : f32
    %18 = vector.broadcast %cst_17 : f32 to vector<8x128xf32>
    %19 = arith.maximumf %17, %18 : vector<8x128xf32>
    %20 = arith.truncf %19 : vector<8x128xf32> to vector<8x128xbf16>
    %c0_18 = arith.constant 0 : index
    %c0_19 = arith.constant 0 : index
    %21 = vector.load %arg9[%c0_18, %c0_19] : memref<8x128xbf16, #tpu.memory_space<vmem>>, vector<8x128xbf16>
    tpu.vector_store %arg9[%c0_18, %c0_19], %20 {strides = array<i32>} : memref<8x128xbf16, #tpu.memory_space<vmem>>, vector<8x128xbf16>,
    %c0_20 = arith.constant 0 : index
    %c0_21 = arith.constant 0 : index
    %22 = vector.load %arg9[%c0_20, %c0_21] : memref<8x128xbf16, #tpu.memory_space<vmem>>, vector<8x128xbf16>
    %c1 = arith.constant 1 : index
    %c0_22 = arith.constant 0 : index
    %c0_23 = arith.constant 0 : index
    %23 = vector.load %arg4[%c1, %c0_22, %c0_23] : memref<2x128x128xbf16, #tpu.memory_space<vmem>>, vector<1x128x128xbf16>
    %24 = vector.shape_cast %23 : vector<1x128x128xbf16> to vector<128x128xbf16>
    %cst_24 = arith.constant dense<0.000000e+00> : vector<8x128xf32>
    %25 = tpu.matmul %22, %24, %cst_24 {dimension_numbers = #tpu.dot_dimension_numbers<[1], [0], [0], [1], [0, 0, 1, 1], [], []>} : vector<8x128xbf16>, vector<128x128xbf16>, vector<8x128xf32> -> vector<8x128xf32>
    %c1_25 = arith.constant 1 : index
    %c0_26 = arith.constant 0 : index
    %c0_27 = arith.constant 0 : index
    %26 = vector.load %arg5[%c1_25, %c0_26, %c0_27] : memref<2x1x128xf32, #tpu.memory_space<vmem>>, vector<1x1x128xf32>
    %27 = vector.shape_cast %26 : vector<1x1x128xf32> to vector<1x128xf32>
    %28 = vector.broadcast %27 : vector<1x128xf32> to vector<8x128xf32>
    %29 = arith.addf %25, %28 : vector<8x128xf32>
    %cst_28 = arith.constant 0.000000e+00 : f32
    %30 = vector.broadcast %cst_28 : f32 to vector<8x128xf32>
    %31 = arith.maximumf %29, %30 : vector<8x128xf32>
    %32 = arith.truncf %31 : vector<8x128xf32> to vector<8x128xbf16>
    %c0_29 = arith.constant 0 : index
    %c0_30 = arith.constant 0 : index
    %33 = vector.load %arg9[%c0_29, %c0_30] : memref<8x128xbf16, #tpu.memory_space<vmem>>, vector<8x128xbf16>
    tpu.vector_store %arg9[%c0_29, %c0_30], %32 {strides = array<i32>} : memref<8x128xbf16, #tpu.memory_space<vmem>>, vector<8x128xbf16>,
    %c0_31 = arith.constant 0 : index
    %c0_32 = arith.constant 0 : index
    %34 = vector.load %arg9[%c0_31, %c0_32] : memref<8x128xbf16, #tpu.memory_space<vmem>>, vector<8x128xbf16>
    %c0_33 = arith.constant 0 : index
    %c0_34 = arith.constant 0 : index
    %35 = vector.load %arg6[%c0_33, %c0_34] : memref<128x128xbf16, #tpu.memory_space<vmem>>, vector<128x128xbf16>
    %cst_35 = arith.constant dense<0.000000e+00> : vector<8x128xf32>
    %36 = tpu.matmul %34, %35, %cst_35 {dimension_numbers = #tpu.dot_dimension_numbers<[1], [0], [0], [1], [0, 0, 1, 1], [], []>} : vector<8x128xbf16>, vector<128x128xbf16>, vector<8x128xf32> -> vector<8x128xf32>
    %c0_36 = arith.constant 0 : index
    %c0_37 = arith.constant 0 : index
    %37 = vector.load %arg7[%c0_36, %c0_37] : memref<1x128xf32, #tpu.memory_space<vmem>>, vector<1x128xf32>
    %38 = vector.broadcast %37 : vector<1x128xf32> to vector<8x128xf32>
    %39 = arith.addf %36, %38 : vector<8x128xf32>
    %c0_38 = arith.constant 0 : index
    %c0_39 = arith.constant 0 : index
    %40 = vector.load %arg8[%c0_38, %c0_39] : memref<8x128xf32, #tpu.memory_space<vmem>>, vector<8x128xf32>
    tpu.vector_store %arg8[%c0_38, %c0_39], %39 {strides = array<i32>} : memref<8x128xf32, #tpu.memory_space<vmem>>, vector<8x128xf32>,
    return
  }
  func.func @transform_0(%arg0: i32) -> (i32, i32) {
    %c0_i32 = arith.constant 0 : i32
    %c0_i32_0 = arith.constant 0 : i32
    return %arg0, %c0_i32 : i32, i32
  }
  func.func @transform_1(%arg0: i32) -> (i32, i32) {
    %c0_i32 = arith.constant 0 : i32
    %c0_i32_0 = arith.constant 0 : i32
    %c0_i32_1 = arith.constant 0 : i32
    return %c0_i32, %c0_i32_0 : i32, i32
  }
  func.func @transform_2(%arg0: i32) -> (i32, i32) {
    %c0_i32 = arith.constant 0 : i32
    %c0_i32_0 = arith.constant 0 : i32
    %c0_i32_1 = arith.constant 0 : i32
    return %c0_i32, %c0_i32_0 : i32, i32
  }
  func.func @transform_3(%arg0: i32) -> (i32, i32, i32) {
    %c0_i32 = arith.constant 0 : i32
    %c0_i32_0 = arith.constant 0 : i32
    %c0_i32_1 = arith.constant 0 : i32
    %c0_i32_2 = arith.constant 0 : i32
    return %c0_i32, %c0_i32_0, %c0_i32_1 : i32, i32, i32
  }
  func.func @transform_4(%arg0: i32) -> (i32, i32, i32) {
    %c0_i32 = arith.constant 0 : i32
    %c0_i32_0 = arith.constant 0 : i32
    %c0_i32_1 = arith.constant 0 : i32
    %c0_i32_2 = arith.constant 0 : i32
    return %c0_i32, %c0_i32_0, %c0_i32_1 : i32, i32, i32
  }
  func.func @transform_5(%arg0: i32) -> (i32, i32) {
    %c0_i32 = arith.constant 0 : i32
    %c0_i32_0 = arith.constant 0 : i32
    %c0_i32_1 = arith.constant 0 : i32
    return %c0_i32, %c0_i32_0 : i32, i32
  }
  func.func @transform_6(%arg0: i32) -> (i32, i32) {
    %c0_i32 = arith.constant 0 : i32
    %c0_i32_0 = arith.constant 0 : i32
    %c0_i32_1 = arith.constant 0 : i32
    return %c0_i32, %c0_i32_0 : i32, i32
  }
  func.func @transform_7(%arg0: i32) -> (i32, i32) {
    %c0_i32 = arith.constant 0 : i32
    %c0_i32_0 = arith.constant 0 : i32
    return %arg0, %c0_i32 : i32, i32
  }
}

module attributes {stable_mosaic.version = 11 : i64} {
  func.func @_fused_mlp_kernel(%arg0: i32, %arg1: memref<8x128xbf16, #tpu.memory_space<vmem>>, %arg2: memref<128x128xbf16, #tpu.memory_space<vmem>>, %arg3: memref<1x128xf32, #tpu.memory_space<vmem>>, %arg4: memref<2x128x128xbf16, #tpu.memory_space<vmem>>, %arg5: memref<2x1x128xf32, #tpu.memory_space<vmem>>, %arg6: memref<128x128xbf16, #tpu.memory_space<vmem>>, %arg7: memref<1x128xf32, #tpu.memory_space<vmem>>, %arg8: memref<8x128xf32, #tpu.memory_space<vmem>>, %arg9: memref<8x128xbf16, #tpu.memory_space<vmem>>) attributes {dimension_semantics = [#tpu.dimension_semantics<parallel>], iteration_bounds = array<i64: 1>, scalar_prefetch = 0 : i64, scratch_operands = 1 : i64, tpu.core_type = #tpu.core_type<tc>, window_params = [{transform_indices = @transform_0, window_bounds = array<i64: 8, 128>}, {pipeline_mode = #tpu.pipeline_mode<synchronous>, transform_indices = @transform_1, window_bounds = array<i64: 128, 128>}, {pipeline_mode = #tpu.pipeline_mode<synchronous>, transform_indices = @transform_2, window_bounds = array<i64: 1, 128>}, {pipeline_mode = #tpu.pipeline_mode<synchronous>, transform_indices = @transform_3, window_bounds = array<i64: 2, 128, 128>}, {pipeline_mode = #tpu.pipeline_mode<synchronous>, transform_indices = @transform_4, window_bounds = array<i64: 2, 1, 128>}, {pipeline_mode = #tpu.pipeline_mode<synchronous>, transform_indices = @transform_5, window_bounds = array<i64: 128, 128>}, {pipeline_mode = #tpu.pipeline_mode<synchronous>, transform_indices = @transform_6, window_bounds = array<i64: 1, 128>}, {transform_indices = @transform_7, window_bounds = array<i64: 8, 128>}]} {
    %c0 = arith.constant 0 : index
    %c0_0 = arith.constant 0 : index
    %0 = vector.load %arg1[%c0, %c0_0] : memref<8x128xbf16, #tpu.memory_space<vmem>>, vector<8x128xbf16>
    %c0_1 = arith.constant 0 : index
    %c0_2 = arith.constant 0 : index
    %1 = vector.load %arg2[%c0_1, %c0_2] : memref<128x128xbf16, #tpu.memory_space<vmem>>, vector<128x128xbf16>
    %cst = arith.constant dense<0.000000e+00> : vector<8x128xf32>
    %2 = tpu.matmul %0, %1, %cst {dimension_numbers = #tpu.dot_dimension_numbers<[1], [0], [0], [1], [0, 0, 1, 1], [], []>} : vector<8x128xbf16>, vector<128x128xbf16>, vector<8x128xf32> -> vector<8x128xf32>
    %c0_3 = arith.constant 0 : index
    %c0_4 = arith.constant 0 : index
    %3 = vector.load %arg3[%c0_3, %c0_4] : memref<1x128xf32, #tpu.memory_space<vmem>>, vector<1x128xf32>
    %4 = vector.broadcast %3 : vector<1x128xf32> to vector<8x128xf32>
    %5 = arith.addf %2, %4 : vector<8x128xf32>
    %cst_5 = arith.constant 0.000000e+00 : f32
    %6 = vector.broadcast %cst_5 : f32 to vector<8x128xf32>
    %7 = arith.maximumf %5, %6 : vector<8x128xf32>
    %8 = arith.truncf %7 : vector<8x128xf32> to vector<8x128xbf16>
    %c0_6 = arith.constant 0 : index
    %c0_7 = arith.constant 0 : index
    %9 = vector.load %arg9[%c0_6, %c0_7] : memref<8x128xbf16, #tpu.memory_space<vmem>>, vector<8x128xbf16>
    tpu.vector_store %arg9[%c0_6, %c0_7], %8 {strides = array<i32>} : memref<8x128xbf16, #tpu.memory_space<vmem>>, vector<8x128xbf16>,
    %c0_8 = arith.constant 0 : index
    %c0_9 = arith.constant 0 : index
    %10 = vector.load %arg9[%c0_8, %c0_9] : memref<8x128xbf16, #tpu.memory_space<vmem>>, vector<8x128xbf16>
    %c0_10 = arith.constant 0 : index
    %c0_11 = arith.constant 0 : index
    %c0_12 = arith.constant 0 : index
    %11 = vector.load %arg4[%c0_10, %c0_11, %c0_12] : memref<2x128x128xbf16, #tpu.memory_space<vmem>>, vector<1x128x128xbf16>
    %12 = vector.shape_cast %11 : vector<1x128x128xbf16> to vector<128x128xbf16>
    %cst_13 = arith.constant dense<0.000000e+00> : vector<8x128xf32>
    %13 = tpu.matmul %10, %12, %cst_13 {dimension_numbers = #tpu.dot_dimension_numbers<[1], [0], [0], [1], [0, 0, 1, 1], [], []>} : vector<8x128xbf16>, vector<128x128xbf16>, vector<8x128xf32> -> vector<8x128xf32>
    %c0_14 = arith.constant 0 : index
    %c0_15 = arith.constant 0 : index
    %c0_16 = arith.constant 0 : index
    %14 = vector.load %arg5[%c0_14, %c0_15, %c0_16] : memref<2x1x128xf32, #tpu.memory_space<vmem>>, vector<1x1x128xf32>
    %15 = vector.shape_cast %14 : vector<1x1x128xf32> to vector<1x128xf32>
    %16 = vector.broadcast %15 : vector<1x128xf32> to vector<8x128xf32>
    %17 = arith.addf %13, %16 : vector<8x128xf32>
    %cst_17 = arith.constant 0.000000e+00 : f32
    %18 = vector.broadcast %cst_17 : f32 to vector<8x128xf32>
    %19 = arith.maximumf %17, %18 : vector<8x128xf32>
    %20 = arith.truncf %19 : vector<8x128xf32> to vector<8x128xbf16>
    %c0_18 = arith.constant 0 : index
    %c0_19 = arith.constant 0 : index
    %21 = vector.load %arg9[%c0_18, %c0_19] : memref<8x128xbf16, #tpu.memory_space<vmem>>, vector<8x128xbf16>
    tpu.vector_store %arg9[%c0_18, %c0_19], %20 {strides = array<i32>} : memref<8x128xbf16, #tpu.memory_space<vmem>>, vector<8x128xbf16>,
    %c0_20 = arith.constant 0 : index
    %c0_21 = arith.constant 0 : index
    %22 = vector.load %arg9[%c0_20, %c0_21] : memref<8x128xbf16, #tpu.memory_space<vmem>>, vector<8x128xbf16>
    %c1 = arith.constant 1 : index
    %c0_22 = arith.constant 0 : index
    %c0_23 = arith.constant 0 : index
    %23 = vector.load %arg4[%c1, %c0_22, %c0_23] : memref<2x128x128xbf16, #tpu.memory_space<vmem>>, vector<1x128x128xbf16>
    %24 = vector.shape_cast %23 : vector<1x128x128xbf16> to vector<128x128xbf16>
    %cst_24 = arith.constant dense<0.000000e+00> : vector<8x128xf32>
    %25 = tpu.matmul %22, %24, %cst_24 {dimension_numbers = #tpu.dot_dimension_numbers<[1], [0], [0], [1], [0, 0, 1, 1], [], []>} : vector<8x128xbf16>, vector<128x128xbf16>, vector<8x128xf32> -> vector<8x128xf32>
    %c1_25 = arith.constant 1 : index
    %c0_26 = arith.constant 0 : index
    %c0_27 = arith.constant 0 : index
    %26 = vector.load %arg5[%c1_25, %c0_26, %c0_27] : memref<2x1x128xf32, #tpu.memory_space<vmem>>, vector<1x1x128xf32>
    %27 = vector.shape_cast %26 : vector<1x1x128xf32> to vector<1x128xf32>
    %28 = vector.broadcast %27 : vector<1x128xf32> to vector<8x128xf32>
    %29 = arith.addf %25, %28 : vector<8x128xf32>
    %cst_28 = arith.constant 0.000000e+00 : f32
    %30 = vector.broadcast %cst_28 : f32 to vector<8x128xf32>
    %31 = arith.maximumf %29, %30 : vector<8x128xf32>
    %32 = arith.truncf %31 : vector<8x128xf32> to vector<8x128xbf16>
    %c0_29 = arith.constant 0 : index
    %c0_30 = arith.constant 0 : index
    %33 = vector.load %arg9[%c0_29, %c0_30] : memref<8x128xbf16, #tpu.memory_space<vmem>>, vector<8x128xbf16>
    tpu.vector_store %arg9[%c0_29, %c0_30], %32 {strides = array<i32>} : memref<8x128xbf16, #tpu.memory_space<vmem>>, vector<8x128xbf16>,
    %c0_31 = arith.constant 0 : index
    %c0_32 = arith.constant 0 : index
    %34 = vector.load %arg9[%c0_31, %c0_32] : memref<8x128xbf16, #tpu.memory_space<vmem>>, vector<8x128xbf16>
    %c0_33 = arith.constant 0 : index
    %c0_34 = arith.constant 0 : index
    %35 = vector.load %arg6[%c0_33, %c0_34] : memref<128x128xbf16, #tpu.memory_space<vmem>>, vector<128x128xbf16>
    %cst_35 = arith.constant dense<0.000000e+00> : vector<8x128xf32>
    %36 = tpu.matmul %34, %35, %cst_35 {dimension_numbers = #tpu.dot_dimension_numbers<[1], [0], [0], [1], [0, 0, 1, 1], [], []>} : vector<8x128xbf16>, vector<128x128xbf16>, vector<8x128xf32> -> vector<8x128xf32>
    %c0_36 = arith.constant 0 : index
    %c0_37 = arith.constant 0 : index
    %37 = vector.load %arg7[%c0_36, %c0_37] : memref<1x128xf32, #tpu.memory_space<vmem>>, vector<1x128xf32>
    %38 = vector.broadcast %37 : vector<1x128xf32> to vector<8x128xf32>
    %39 = arith.addf %36, %38 : vector<8x128xf32>
    %c0_38 = arith.constant 0 : index
    %c0_39 = arith.constant 0 : index
    %40 = vector.load %arg8[%c0_38, %c0_39] : memref<8x128xf32, #tpu.memory_space<vmem>>, vector<8x128xf32>
    tpu.vector_store %arg8[%c0_38, %c0_39], %39 {strides = array<i32>} : memref<8x128xf32, #tpu.memory_space<vmem>>, vector<8x128xf32>,
    return
  }
  func.func @transform_0(%arg0: i32) -> (i32, i32) {
    %c0_i32 = arith.constant 0 : i32
    %c0_i32_0 = arith.constant 0 : i32
    return %arg0, %c0_i32 : i32, i32
  }
  func.func @transform_1(%arg0: i32) -> (i32, i32) {
    %c0_i32 = arith.constant 0 : i32
    %c0_i32_0 = arith.constant 0 : i32
    %c0_i32_1 = arith.constant 0 : i32
    return %c0_i32, %c0_i32_0 : i32, i32
  }
  func.func @transform_2(%arg0: i32) -> (i32, i32) {
    %c0_i32 = arith.constant 0 : i32
    %c0_i32_0 = arith.constant 0 : i32
    %c0_i32_1 = arith.constant 0 : i32
    return %c0_i32, %c0_i32_0 : i32, i32
  }
  func.func @transform_3(%arg0: i32) -> (i32, i32, i32) {
    %c0_i32 = arith.constant 0 : i32
    %c0_i32_0 = arith.constant 0 : i32
    %c0_i32_1 = arith.constant 0 : i32
    %c0_i32_2 = arith.constant 0 : i32
    return %c0_i32, %c0_i32_0, %c0_i32_1 : i32, i32, i32
  }
  func.func @transform_4(%arg0: i32) -> (i32, i32, i32) {
    %c0_i32 = arith.constant 0 : i32
    %c0_i32_0 = arith.constant 0 : i32
    %c0_i32_1 = arith.constant 0 : i32
    %c0_i32_2 = arith.constant 0 : i32
    return %c0_i32, %c0_i32_0, %c0_i32_1 : i32, i32, i32
  }
  func.func @transform_5(%arg0: i32) -> (i32, i32) {
    %c0_i32 = arith.constant 0 : i32
    %c0_i32_0 = arith.constant 0 : i32
    %c0_i32_1 = arith.constant 0 : i32
    return %c0_i32, %c0_i32_0 : i32, i32
  }
  func.func @transform_6(%arg0: i32) -> (i32, i32) {
    %c0_i32 = arith.constant 0 : i32
    %c0_i32_0 = arith.constant 0 : i32
    %c0_i32_1 = arith.constant 0 : i32
    return %c0_i32, %c0_i32_0 : i32, i32
  }
  func.func @transform_7(%arg0: i32) -> (i32, i32) {
    %c0_i32 = arith.constant 0 : i32
    %c0_i32_0 = arith.constant 0 : i32
    return %arg0, %c0_i32 : i32, i32
  }
}

</mosaic_0001>

<bundles_post_ra>
// kernel: mlp_forward.2
= control target key start
LH: loop header
LB: loop body
LE: loop exit
PB: predicated region body
PF: predicated region fallthrough
CT: control target
= control target key end

     0   :  { %s971_s0 = inlined_call_operand.vmem [shape: bf16[128,128], index: 0, kind: input, shape index: {}]   ;;  %s972_s1 = inlined_call_operand.vmem [shape: f32[1,128], index: 1, kind: input, shape index: {}]   ;;  %s973_s2 = inlined_call_operand.vmem [shape: bf16[2,128,128], index: 2, kind: input, shape index: {}]   ;;  %s974_s3 = inlined_call_operand.vmem [shape: f32[2,1,128], index: 3, kind: input, shape index: {}]   ;;  %s975_s4 = inlined_call_operand.vmem [shape: bf16[128,128], index: 4, kind: input, shape index: {}]   ;;  %s976_s5 = inlined_call_operand.vmem [shape: f32[1,128], index: 5, kind: input, shape index: {}]   ;;  %s977_s6 = inlined_call_operand.vmem [shape: bf16[8,16], index: 6, kind: input, shape index: {}]   ;;  %s978_s7 = inlined_call_operand.<no memory space> [shape: bf16[], index: 7, kind: input, shape index: {}]   ;;  %s979_s8 = inlined_call_operand.hbm [shape: f32[8,128], index: 8, kind: output, shape index: {}]  }
   0x1   :  { %v13_v0 = vstv %s978_s7 }
   0x2   :  { %v14_v1 = vunpack.i.l.bf16 %v13_v0 }
   0x3   :  { %v700_v2 = vld [vmem:[%s971_s0] sm:$0xff]   ;;  %v45_v3 = vlaneseq  ;;  %v756_v4 = vmov 0.0   ;;  %v701_v5 = vld [vmem:[%s971_s0 + $0x8] sm:$0xff]   ;;  %vm757_vm0 = vmmov 0   ;;  %v702_v7 = vld [vmem:[%s971_s0 + $0x10] sm:$0xff]  }
   0x4   :  { %617 = vmatprep.subr.bf16.mxu0 %v756_v4  ;;  %637 = vmatprep.subr.bf16.mxu1 %v756_v4  ;;  %v42_v8 = vld [vmem:[%s977_s6] sm:$0xf]  ;;  %v703_v11 = vld [vmem:[%s971_s0 + $0x18] sm:$0xff]   ;;  %v709_v13 = vld [vmem:[%s973_s2 + $0x8] sm:$0xff]  }
   0x5   :  { %618 = vmatpush3.bf16.msra.mxu0 %v700_v2  ;;  %633 = vmatprep.mubr.msk.bf16.mxu0 %vm757_vm0, %v756_v4  ;;  %v46_v6 = vand.u32 127, %v45_v3  ;;  %v43_v9 = vunpack.c.l.bf16 %v42_v8  ;;  %v708_v10 = vld [vmem:[%s973_s2] sm:$0xff]   ;;  %v710_v16 = vld [vmem:[%s973_s2 + $0x10] sm:$0xff]   ;;  %v705_v17 = vld [vmem:[%s971_s0 + $0x28] sm:$0xff]  }
   0x6   :  { %619 = vmatprep.subr.bf16.mxu0 %v756_v4  ;;  %653 = vmatprep.mubr.msk.bf16.mxu1 %vm757_vm0, %v756_v4  ;;  %v704_v14 = vld [vmem:[%s971_s0 + $0x20] sm:$0xff]   ;;  %v711_v18 = vld [vmem:[%s973_s2 + $0x18] sm:$0xff]   ;;  %v706_v19 = vld [vmem:[%s971_s0 + $0x30] sm:$0xff]  }
   0x7   :  { %vm48_vm1 = vcmp.lt.s32.totalorder %v46_v6, 16  ;;  %638 = vmatpush3.bf16.msra.mxu1 %v708_v10  ;;  %v707_v20 = vld [vmem:[%s971_s0 + $0x38] sm:$0xff]  }
   0x8   :  { %v49_v12 = vsel %vm48_vm1, %v43_v9, %v14_v1  ;;  %639 = vmatprep.subr.bf16.mxu1 %v756_v4 }
   0x9   :  { %620 = vmatpush3.bf16.msra.mxu0 %v701_v5  ;;  %v50_v15 = vpack.c.bf16 %v756_v4, %v49_v12 }
   0xa   :  { %621 = vmatprep.subr.bf16.mxu0 %v756_v4 }
   0xb   :  { %52 = vst [vmem:[#allocation10] sm:$0xf] %v50_v15  ;;  %640 = vmatpush3.bf16.msra.mxu1 %v709_v13 }
   0xc   :  { %641 = vmatprep.subr.bf16.mxu1 %v756_v4 }
   0xd   :  { %622 = vmatpush3.bf16.msra.mxu0 %v702_v7 }
   0xe   :  { %623 = vmatprep.subr.bf16.mxu0 %v756_v4 }
   0xf   :  { %642 = vmatpush3.bf16.msra.mxu1 %v710_v16 }
  0x10   :  { %643 = vmatprep.subr.bf16.mxu1 %v756_v4 }
  0x11   :  { %624 = vmatpush3.bf16.msra.mxu0 %v703_v11 }
  0x12   :  { %625 = vmatprep.subr.bf16.mxu0 %v756_v4 }
  0x13   :  { %644 = vmatpush3.bf16.msra.mxu1 %v711_v18 }
  0x14   :  { %645 = vmatprep.subr.bf16.mxu1 %v756_v4 }
  0x15   :  { %626 = vmatpush3.bf16.msra.mxu0 %v704_v14 }
  0x16   :  { %627 = vmatprep.subr.bf16.mxu0 %v756_v4 }
  0x19   :  { %628 = vmatpush3.bf16.msra.mxu0 %v705_v17 }
  0x1a   :  { %629 = vmatprep.subr.bf16.mxu0 %v756_v4 }
  0x1d   :  { %630 = vmatpush3.bf16.msra.mxu0 %v706_v19 }
  0x1e   :  { %18 = vsyncpa [#allocation9], 0  ;;  %631 = vmatprep.subr.bf16.mxu0 %v756_v4  ;;  %v54_v21 = vld [vmem:[#allocation10] sm:$0xf]  ;;  %v712_v22 = vld [vmem:[%s973_s2 + $0x20] sm:$0xff]  }
  0x1f   :  { %646 = vmatpush3.bf16.msra.mxu1 %v712_v22  ;;  %v713_v23 = vld [vmem:[%s973_s2 + $0x28] sm:$0xff]   ;;  %v714_v24 = vld [vmem:[%s973_s2 + $0x30] sm:$0xff]   ;;  %v715_v25 = vld [vmem:[%s973_s2 + $0x38] sm:$0xff]  }
  0x20   :  { %647 = vmatprep.subr.bf16.mxu1 %v756_v4  ;;  %v716_v26 = vld [vmem:[%s973_s2 + $0x40] sm:$0xff]   ;;  %v717_v27 = vld [vmem:[%s973_s2 + $0x48] sm:$0xff]   ;;  %v718_v28 = vld [vmem:[%s973_s2 + $0x50] sm:$0xff]  }
  0x21   :  { %632 = vmatpush3.bf16.msra.mxu0 %v707_v20  ;;  %v719_v29 = vld [vmem:[%s973_s2 + $0x58] sm:$0xff]   ;;  %v528_v30 = vld [vmem:[%s972_s1] ss:$0 sm:$0xff]  ;;  %v721_v40 = vld [vmem:[%s973_s2 + $0x68] sm:$0xff]  }
  0x22   :  { %657 = vmatprep.subr.bf16.mxu0 %v756_v4  ;;  %v720_v39 = vld [vmem:[%s973_s2 + $0x60] sm:$0xff]   ;;  %v722_v41 = vld [vmem:[%s973_s2 + $0x70] sm:$0xff]   ;;  %v723_v42 = vld [vmem:[%s973_s2 + $0x78] sm:$0xff]  }
  0x23   :  { %648 = vmatpush3.bf16.msra.mxu1 %v713_v23  ;;  %v724_v43 = vld [vmem:[%s975_s4] sm:$0xff]   ;;  %v725_v44 = vld [vmem:[%s975_s4 + $0x8] sm:$0xff]   ;;  %v726_v45 = vld [vmem:[%s975_s4 + $0x10] sm:$0xff]  }
  0x24   :  { %634 = vmatmul.mubr.bf16.vlgmr.msra.gmra.mrb[0].mxu0 %v54_v21  ;;  %649 = vmatprep.subr.bf16.mxu1 %v756_v4  ;;  %v727_v46 = vld [vmem:[%s975_s4 + $0x18] sm:$0xff]   ;;  %v537_v47 = vld [vmem:[%s974_s3] ss:$0 sm:$0xff]  ;;  %v729_v57 = vld [vmem:[%s975_s4 + $0x28] sm:$0xff]  }
  0x25   :  { %673 = vmatprep.mubr.msk.bf16.mxu0 %vm757_vm0, %v756_v4  ;;  %658 = vmatpush3.bf16.msra.mxu0 %v716_v26  ;;  %v728_v56 = vld [vmem:[%s975_s4 + $0x20] sm:$0xff]   ;;  %v730_v58 = vld [vmem:[%s975_s4 + $0x30] sm:$0xff]   ;;  %v731_v59 = vld [vmem:[%s975_s4 + $0x38] sm:$0xff]   ;;  %s758_s4 = smov [#allocation8]  }
  0x26   :  { %659 = vmatprep.subr.bf16.mxu0 %v756_v4  ;;  %v563_v60 = vld [vmem:[%s974_s3 + $0x1] ss:$0 sm:$0xff]  ;;  %v572_v6 = vld [vmem:[%s976_s5] ss:$0 sm:$0xff]  ;;  %s520_s26 = sshll.u32 %s758_s4, 4  ;;  %s521_s26 = int_to_ptr.vmem [resolvable:$true] %s520_s26 }
  0x27   :  { %650 = vmatpush3.bf16.msra.mxu1 %v714_v24  ;;  %s732_s3 = scalar_lea.vmem %s521_s26, 128  ;;  %p737_p1 = scmp.lt.s32.totalorder %s521_s26, %s521_s26 }
  0x28   :  { %651 = vmatprep.subr.bf16.mxu1 %v756_v4  ;;  %p733_p0 = scmp.ne.s32.totalorder %s521_s26, %s732_s3  ;;  %p738_p2 = scmp.lt.s32.totalorder %s732_s3, %s732_s3 }
  0x29   :  { %660 = vmatpush3.bf16.msra.mxu0 %v717_v27 }
  0x2a   :  { %661 = vmatprep.subr.bf16.mxu0 %v756_v4  ;;  %p739_p3 = por %p738_p2, %p737_p1 }
  0x2b   :  { %652 = vmatpush3.bf16.msra.mxu1 %v715_v25 }
  0x2c   :  { %677 = vmatprep.subr.bf16.mxu1 %v756_v4  ;;  %p740_p4 = pnand %p739_p3, %p733_p0 }
  0x2d   :  { %662 = vmatpush3.bf16.msra.mxu0 %v718_v28 }
  0x2e   :  { %663 = vmatprep.subr.bf16.mxu0 %v756_v4 }
  0x31   :  { %664 = vmatpush3.bf16.msra.mxu0 %v719_v29 }
  0x32   :  { %665 = vmatprep.subr.bf16.mxu0 %v756_v4 }
  0x35   :  { %666 = vmatpush3.bf16.msra.mxu0 %v720_v39 }
  0x36   :  { %667 = vmatprep.subr.bf16.mxu0 %v756_v4 }
  0x39   :  { %668 = vmatpush3.bf16.msra.mxu0 %v721_v40 }
  0x3a   :  { %669 = vmatprep.subr.bf16.mxu0 %v756_v4 }
  0x3d   :  { %670 = vmatpush3.bf16.msra.mxu0 %v722_v41 }
  0x3e   :  { %671 = vmatprep.subr.bf16.mxu0 %v756_v4 }
  0x41   :  { %672 = vmatpush3.bf16.msra.mxu0 %v723_v42 }
  0xf7   :  { %v160_v31 = vpop.f32.mrb[0].mxu0 }
  0xf8   :  { %v161_v32 = vadd.f32 %v528_v30, %v160_v31  ;;  %v635_v33 = vpop.f32.mrb[1].mxu0 }
  0xf9   :  { %v163_v34 = vpop.f32.mrb[2].mxu0 }
  0xfa   :  { %v166_v35 = vmax.f32 %v161_v32, 0.0  ;;  %v636_v36 = vpop.f32.mrb[3].mxu0 }
  0xfc   :  { %v167_v37 = vpack.c.bf16 %v166_v35, %v166_v35 }
  0xfe   :  { %168 = vst [vmem:[#allocation2] sm:$0xf] %v167_v37 }
 0x105   :  { %v169_v38 = vld [vmem:[#allocation2] sm:$0xf] }
 0x106   :  { %654 = vmatmul.mubr.bf16.vlgmr.msra.gmra.mrb[0].mxu1 %v169_v38 }
 0x107   :  { %693 = vmatprep.mubr.msk.bf16.mxu1 %vm757_vm0, %v756_v4  ;;  %678 = vmatpush3.bf16.msra.mxu1 %v724_v43 }
 0x108   :  { %679 = vmatprep.subr.bf16.mxu1 %v756_v4 }
 0x10b   :  { %680 = vmatpush3.bf16.msra.mxu1 %v725_v44 }
 0x10c   :  { %681 = vmatprep.subr.bf16.mxu1 %v756_v4 }
 0x10f   :  { %682 = vmatpush3.bf16.msra.mxu1 %v726_v45 }
 0x110   :  { %683 = vmatprep.subr.bf16.mxu1 %v756_v4 }
 0x113   :  { %684 = vmatpush3.bf16.msra.mxu1 %v727_v46 }
 0x114   :  { %685 = vmatprep.subr.bf16.mxu1 %v756_v4 }
 0x117   :  { %686 = vmatpush3.bf16.msra.mxu1 %v728_v56 }
 0x118   :  { %687 = vmatprep.subr.bf16.mxu1 %v756_v4 }
 0x11b   :  { %688 = vmatpush3.bf16.msra.mxu1 %v729_v57 }
 0x11c   :  { %689 = vmatprep.subr.bf16.mxu1 %v756_v4 }
 0x11f   :  { %690 = vmatpush3.bf16.msra.mxu1 %v730_v58 }
 0x120   :  { %691 = vmatprep.subr.bf16.mxu1 %v756_v4 }
 0x123   :  { %692 = vmatpush3.bf16.msra.mxu1 %v731_v59 }
 0x1d9   :  { %v275_v48 = vpop.f32.mrb[0].mxu1 }
 0x1da   :  { %v276_v49 = vadd.f32 %v537_v47, %v275_v48  ;;  %v655_v50 = vpop.f32.mrb[1].mxu1 }
 0x1db   :  { %v278_v51 = vpop.f32.mrb[2].mxu1 }
 0x1dc   :  { %v281_v52 = vmax.f32 %v276_v49, 0.0  ;;  %v656_v53 = vpop.f32.mrb[3].mxu1 }
 0x1de   :  { %v282_v54 = vpack.c.bf16 %v281_v52, %v281_v52 }
 0x1e0   :  { %283 = vst [vmem:[#allocation2] sm:$0xf] %v282_v54 }
 0x1e7   :  { %v284_v55 = vld [vmem:[#allocation2] sm:$0xf] }
 0x1e8   :  { %674 = vmatmul.mubr.bf16.vlgmr.msra.gmra.mrb[4].mxu0 %v284_v55 }
 0x2bb   :  { %v392_v61 = vpop.f32.mrb[4].mxu0 }
 0x2bc   :  { %v393_v62 = vadd.f32 %v563_v60, %v392_v61  ;;  %v675_v63 = vpop.f32.mrb[5].mxu0 }
 0x2bd   :  { %v395_v0 = vpop.f32.mrb[6].mxu0 }
 0x2be   :  { %v398_v1 = vmax.f32 %v393_v62, 0.0  ;;  %v676_v2 = vpop.f32.mrb[7].mxu0 }
 0x2c0   :  { %v399_v3 = vpack.c.bf16 %v398_v1, %v398_v1 }
 0x2c2   :  { %400 = vst [vmem:[#allocation2] sm:$0xf] %v399_v3 }
 0x2c9   :  { %v401_v5 = vld [vmem:[#allocation2] sm:$0xf] }
 0x2ca   :  { %694 = vmatmul.mubr.bf16.vlgmr.msra.gmra.mrb[4].mxu1 %v401_v5 }
 0x39d   :  { %v507_v4 = vpop.f32.mrb[4].mxu1 }
 0x39e   :  { %v508_v7 = vadd.f32 %v572_v6, %v507_v4  ;;  %v695_v8 = vpop.f32.mrb[5].mxu1 }
 0x39f   :  { %v510_v9 = vpop.f32.mrb[6].mxu1 }
 0x3a0   :  { %513 = vst [vmem:[#allocation8] sm:$0xff] %v508_v7  ;;  %v696_v10 = vpop.f32.mrb[7].mxu1 }
 0x3a1   :  { %743 = shalt.err (!%p740_p4)
}
 0x3a2   :  { %s744_s5 = scalar_lea.hbm %s979_s8, 128 }
 0x3a3   :  { %p745_p5 = scmp.ne.s32.totalorder %s979_s8, %s744_s5  ;;  %p748_p6 = scmp.lt.u32.totalorder %s744_s5, %s979_s8 }
 0x3a5   :  { %p750_p7 = pnand %p748_p6, %p745_p5 }
 0x3a7   :  { %753 = shalt.err (!%p750_p7)
}
 0x3a8   :  { %523 = dma.vmem_to_hbm [thread:$0]  %s521_s26, 128, %s979_s8, [#allocation9]  }
 0x3a9   :  { %754 = dma.done.wait [#allocation9], 128  }
 0x3aa   :  { %755 = vsyncadd [#allocation9], 4294967168 }
 0x3ab   :  { %527 = vsyncpa [#allocation9], 1 }

// kernel: mlp_forward.2
= control target key start
LH: loop header
LB: loop body
LE: loop exit
PB: predicated region body
PF: predicated region fallthrough
CT: control target
= control target key end

     0   :  { %s971_s0 = inlined_call_operand.vmem [shape: bf16[128,128], index: 0, kind: input, shape index: {}]   ;;  %s972_s1 = inlined_call_operand.vmem [shape: f32[1,128], index: 1, kind: input, shape index: {}]   ;;  %s973_s2 = inlined_call_operand.vmem [shape: bf16[2,128,128], index: 2, kind: input, shape index: {}]   ;;  %s974_s3 = inlined_call_operand.vmem [shape: f32[2,1,128], index: 3, kind: input, shape index: {}]   ;;  %s975_s4 = inlined_call_operand.vmem [shape: bf16[128,128], index: 4, kind: input, shape index: {}]   ;;  %s976_s5 = inlined_call_operand.vmem [shape: f32[1,128], index: 5, kind: input, shape index: {}]   ;;  %s977_s6 = inlined_call_operand.vmem [shape: bf16[8,16], index: 6, kind: input, shape index: {}]   ;;  %s978_s7 = inlined_call_operand.<no memory space> [shape: bf16[], index: 7, kind: input, shape index: {}]   ;;  %s979_s8 = inlined_call_operand.hbm [shape: f32[8,128], index: 8, kind: output, shape index: {}]  }
   0x1   :  { %v13_v0 = vstv %s978_s7 }
   0x2   :  { %v14_v1 = vunpack.i.l.bf16 %v13_v0 }
   0x3   :  { %v700_v2 = vld [vmem:[%s971_s0] sm:$0xff]   ;;  %v45_v3 = vlaneseq  ;;  %v756_v4 = vmov 0.0   ;;  %v701_v5 = vld [vmem:[%s971_s0 + $0x8] sm:$0xff]   ;;  %vm757_vm0 = vmmov 0   ;;  %v702_v7 = vld [vmem:[%s971_s0 + $0x10] sm:$0xff]  }
   0x4   :  { %617 = vmatprep.subr.bf16.mxu0 %v756_v4  ;;  %637 = vmatprep.subr.bf16.mxu1 %v756_v4  ;;  %v42_v8 = vld [vmem:[%s977_s6] sm:$0xf]  ;;  %v703_v11 = vld [vmem:[%s971_s0 + $0x18] sm:$0xff]   ;;  %v709_v13 = vld [vmem:[%s973_s2 + $0x8] sm:$0xff]  }
   0x5   :  { %618 = vmatpush3.bf16.msra.mxu0 %v700_v2  ;;  %633 = vmatprep.mubr.msk.bf16.mxu0 %vm757_vm0, %v756_v4  ;;  %v46_v6 = vand.u32 127, %v45_v3  ;;  %v43_v9 = vunpack.c.l.bf16 %v42_v8  ;;  %v708_v10 = vld [vmem:[%s973_s2] sm:$0xff]   ;;  %v710_v16 = vld [vmem:[%s973_s2 + $0x10] sm:$0xff]   ;;  %v705_v17 = vld [vmem:[%s971_s0 + $0x28] sm:$0xff]  }
   0x6   :  { %619 = vmatprep.subr.bf16.mxu0 %v756_v4  ;;  %653 = vmatprep.mubr.msk.bf16.mxu1 %vm757_vm0, %v756_v4  ;;  %v704_v14 = vld [vmem:[%s971_s0 + $0x20] sm:$0xff]   ;;  %v711_v18 = vld [vmem:[%s973_s2 + $0x18] sm:$0xff]   ;;  %v706_v19 = vld [vmem:[%s971_s0 + $0x30] sm:$0xff]  }
   0x7   :  { %vm48_vm1 = vcmp.lt.s32.totalorder %v46_v6, 16  ;;  %638 = vmatpush3.bf16.msra.mxu1 %v708_v10  ;;  %v707_v20 = vld [vmem:[%s971_s0 + $0x38] sm:$0xff]  }
   0x8   :  { %v49_v12 = vsel %vm48_vm1, %v43_v9, %v14_v1  ;;  %639 = vmatprep.subr.bf16.mxu1 %v756_v4 }
   0x9   :  { %620 = vmatpush3.bf16.msra.mxu0 %v701_v5  ;;  %v50_v15 = vpack.c.bf16 %v756_v4, %v49_v12 }
   0xa   :  { %621 = vmatprep.subr.bf16.mxu0 %v756_v4 }
   0xb   :  { %52 = vst [vmem:[#allocation10] sm:$0xf] %v50_v15  ;;  %640 = vmatpush3.bf16.msra.mxu1 %v709_v13 }
   0xc   :  { %641 = vmatprep.subr.bf16.mxu1 %v756_v4 }
   0xd   :  { %622 = vmatpush3.bf16.msra.mxu0 %v702_v7 }
   0xe   :  { %623 = vmatprep.subr.bf16.mxu0 %v756_v4 }
   0xf   :  { %642 = vmatpush3.bf16.msra.mxu1 %v710_v16 }
  0x10   :  { %643 = vmatprep.subr.bf16.mxu1 %v756_v4 }
  0x11   :  { %624 = vmatpush3.bf16.msra.mxu0 %v703_v11 }
  0x12   :  { %625 = vmatprep.subr.bf16.mxu0 %v756_v4 }
  0x13   :  { %644 = vmatpush3.bf16.msra.mxu1 %v711_v18 }
  0x14   :  { %645 = vmatprep.subr.bf16.mxu1 %v756_v4 }
  0x15   :  { %626 = vmatpush3.bf16.msra.mxu0 %v704_v14 }
  0x16   :  { %627 = vmatprep.subr.bf16.mxu0 %v756_v4 }
  0x19   :  { %628 = vmatpush3.bf16.msra.mxu0 %v705_v17 }
  0x1a   :  { %629 = vmatprep.subr.bf16.mxu0 %v756_v4 }
  0x1d   :  { %630 = vmatpush3.bf16.msra.mxu0 %v706_v19 }
  0x1e   :  { %18 = vsyncpa [#allocation9], 0  ;;  %631 = vmatprep.subr.bf16.mxu0 %v756_v4  ;;  %v54_v21 = vld [vmem:[#allocation10] sm:$0xf]  ;;  %v712_v22 = vld [vmem:[%s973_s2 + $0x20] sm:$0xff]  }
  0x1f   :  { %646 = vmatpush3.bf16.msra.mxu1 %v712_v22  ;;  %v713_v23 = vld [vmem:[%s973_s2 + $0x28] sm:$0xff]   ;;  %v714_v24 = vld [vmem:[%s973_s2 + $0x30] sm:$0xff]   ;;  %v715_v25 = vld [vmem:[%s973_s2 + $0x38] sm:$0xff]  }
  0x20   :  { %647 = vmatprep.subr.bf16.mxu1 %v756_v4  ;;  %v716_v26 = vld [vmem:[%s973_s2 + $0x40] sm:$0xff]   ;;  %v717_v27 = vld [vmem:[%s973_s2 + $0x48] sm:$0xff]   ;;  %v718_v28 = vld [vmem:[%s973_s2 + $0x50] sm:$0xff]  }
  0x21   :  { %632 = vmatpush3.bf16.msra.mxu0 %v707_v20  ;;  %v719_v29 = vld [vmem:[%s973_s2 + $0x58] sm:$0xff]   ;;  %v528_v30 = vld [vmem:[%s972_s1] ss:$0 sm:$0xff]  ;;  %v721_v40 = vld [vmem:[%s973_s2 + $0x68] sm:$0xff]  }
  0x22   :  { %657 = vmatprep.subr.bf16.mxu0 %v756_v4  ;;  %v720_v39 = vld [vmem:[%s973_s2 + $0x60] sm:$0xff]   ;;  %v722_v41 = vld [vmem:[%s973_s2 + $0x70] sm:$0xff]   ;;  %v723_v42 = vld [vmem:[%s973_s2 + $0x78] sm:$0xff]  }
  0x23   :  { %648 = vmatpush3.bf16.msra.mxu1 %v713_v23  ;;  %v724_v43 = vld [vmem:[%s975_s4] sm:$0xff]   ;;  %v725_v44 = vld [vmem:[%s975_s4 + $0x8] sm:$0xff]   ;;  %v726_v45 = vld [vmem:[%s975_s4 + $0x10] sm:$0xff]  }
  0x24   :  { %634 = vmatmul.mubr.bf16.vlgmr.msra.gmra.mrb[0].mxu0 %v54_v21  ;;  %649 = vmatprep.subr.bf16.mxu1 %v756_v4  ;;  %v727_v46 = vld [vmem:[%s975_s4 + $0x18] sm:$0xff]   ;;  %v537_v47 = vld [vmem:[%s974_s3] ss:$0 sm:$0xff]  ;;  %v729_v57 = vld [vmem:[%s975_s4 + $0x28] sm:$0xff]  }
  0x25   :  { %673 = vmatprep.mubr.msk.bf16.mxu0 %vm757_vm0, %v756_v4  ;;  %658 = vmatpush3.bf16.msra.mxu0 %v716_v26  ;;  %v728_v56 = vld [vmem:[%s975_s4 + $0x20] sm:$0xff]   ;;  %v730_v58 = vld [vmem:[%s975_s4 + $0x30] sm:$0xff]   ;;  %v731_v59 = vld [vmem:[%s975_s4 + $0x38] sm:$0xff]   ;;  %s758_s4 = smov [#allocation8]  }
  0x26   :  { %659 = vmatprep.subr.bf16.mxu0 %v756_v4  ;;  %v563_v60 = vld [vmem:[%s974_s3 + $0x1] ss:$0 sm:$0xff]  ;;  %v572_v6 = vld [vmem:[%s976_s5] ss:$0 sm:$0xff]  ;;  %s520_s26 = sshll.u32 %s758_s4, 4  ;;  %s521_s26 = int_to_ptr.vmem [resolvable:$true] %s520_s26 }
  0x27   :  { %650 = vmatpush3.bf16.msra.mxu1 %v714_v24  ;;  %s732_s3 = scalar_lea.vmem %s521_s26, 128  ;;  %p737_p1 = scmp.lt.s32.totalorder %s521_s26, %s521_s26 }
  0x28   :  { %651 = vmatprep.subr.bf16.mxu1 %v756_v4  ;;  %p733_p0 = scmp.ne.s32.totalorder %s521_s26, %s732_s3  ;;  %p738_p2 = scmp.lt.s32.totalorder %s732_s3, %s732_s3 }
  0x29   :  { %660 = vmatpush3.bf16.msra.mxu0 %v717_v27 }
  0x2a   :  { %661 = vmatprep.subr.bf16.mxu0 %v756_v4  ;;  %p739_p3 = por %p738_p2, %p737_p1 }
  0x2b   :  { %652 = vmatpush3.bf16.msra.mxu1 %v715_v25 }
  0x2c   :  { %677 = vmatprep.subr.bf16.mxu1 %v756_v4  ;;  %p740_p4 = pnand %p739_p3, %p733_p0 }
  0x2d   :  { %662 = vmatpush3.bf16.msra.mxu0 %v718_v28 }
  0x2e   :  { %663 = vmatprep.subr.bf16.mxu0 %v756_v4 }
  0x31   :  { %664 = vmatpush3.bf16.msra.mxu0 %v719_v29 }
  0x32   :  { %665 = vmatprep.subr.bf16.mxu0 %v756_v4 }
  0x35   :  { %666 = vmatpush3.bf16.msra.mxu0 %v720_v39 }
  0x36   :  { %667 = vmatprep.subr.bf16.mxu0 %v756_v4 }
  0x39   :  { %668 = vmatpush3.bf16.msra.mxu0 %v721_v40 }
  0x3a   :  { %669 = vmatprep.subr.bf16.mxu0 %v756_v4 }
  0x3d   :  { %670 = vmatpush3.bf16.msra.mxu0 %v722_v41 }
  0x3e   :  { %671 = vmatprep.subr.bf16.mxu0 %v756_v4 }
  0x41   :  { %672 = vmatpush3.bf16.msra.mxu0 %v723_v42 }
  0xf7   :  { %v160_v31 = vpop.f32.mrb[0].mxu0 }
  0xf8   :  { %v161_v32 = vadd.f32 %v528_v30, %v160_v31  ;;  %v635_v33 = vpop.f32.mrb[1].mxu0 }
  0xf9   :  { %v163_v34 = vpop.f32.mrb[2].mxu0 }
  0xfa   :  { %v166_v35 = vmax.f32 %v161_v32, 0.0  ;;  %v636_v36 = vpop.f32.mrb[3].mxu0 }
  0xfc   :  { %v167_v37 = vpack.c.bf16 %v166_v35, %v166_v35 }
  0xfe   :  { %168 = vst [vmem:[#allocation2] sm:$0xf] %v167_v37 }
 0x105   :  { %v169_v38 = vld [vmem:[#allocation2] sm:$0xf] }
 0x106   :  { %654 = vmatmul.mubr.bf16.vlgmr.msra.gmra.mrb[0].mxu1 %v169_v38 }
 0x107   :  { %693 = vmatprep.mubr.msk.bf16.mxu1 %vm757_vm0, %v756_v4  ;;  %678 = vmatpush3.bf16.msra.mxu1 %v724_v43 }
 0x108   :  { %679 = vmatprep.subr.bf16.mxu1 %v756_v4 }
 0x10b   :  { %680 = vmatpush3.bf16.msra.mxu1 %v725_v44 }
 0x10c   :  { %681 = vmatprep.subr.bf16.mxu1 %v756_v4 }
 0x10f   :  { %682 = vmatpush3.bf16.msra.mxu1 %v726_v45 }
 0x110   :  { %683 = vmatprep.subr.bf16.mxu1 %v756_v4 }
 0x113   :  { %684 = vmatpush3.bf16.msra.mxu1 %v727_v46 }
 0x114   :  { %685 = vmatprep.subr.bf16.mxu1 %v756_v4 }
 0x117   :  { %686 = vmatpush3.bf16.msra.mxu1 %v728_v56 }
 0x118   :  { %687 = vmatprep.subr.bf16.mxu1 %v756_v4 }
 0x11b   :  { %688 = vmatpush3.bf16.msra.mxu1 %v729_v57 }
 0x11c   :  { %689 = vmatprep.subr.bf16.mxu1 %v756_v4 }
 0x11f   :  { %690 = vmatpush3.bf16.msra.mxu1 %v730_v58 }
 0x120   :  { %691 = vmatprep.subr.bf16.mxu1 %v756_v4 }
 0x123   :  { %692 = vmatpush3.bf16.msra.mxu1 %v731_v59 }
 0x1d9   :  { %v275_v48 = vpop.f32.mrb[0].mxu1 }
 0x1da   :  { %v276_v49 = vadd.f32 %v537_v47, %v275_v48  ;;  %v655_v50 = vpop.f32.mrb[1].mxu1 }
 0x1db   :  { %v278_v51 = vpop.f32.mrb[2].mxu1 }
 0x1dc   :  { %v281_v52 = vmax.f32 %v276_v49, 0.0  ;;  %v656_v53 = vpop.f32.mrb[3].mxu1 }
 0x1de   :  { %v282_v54 = vpack.c.bf16 %v281_v52, %v281_v52 }
 0x1e0   :  { %283 = vst [vmem:[#allocation2] sm:$0xf] %v282_v54 }
 0x1e7   :  { %v284_v55 = vld [vmem:[#allocation2] sm:$0xf] }
 0x1e8   :  { %674 = vmatmul.mubr.bf16.vlgmr.msra.gmra.mrb[4].mxu0 %v284_v55 }
 0x2bb   :  { %v392_v61 = vpop.f32.mrb[4].mxu0 }
 0x2bc   :  { %v393_v62 = vadd.f32 %v563_v60, %v392_v61  ;;  %v675_v63 = vpop.f32.mrb[5].mxu0 }
 0x2bd   :  { %v395_v0 = vpop.f32.mrb[6].mxu0 }
 0x2be   :  { %v398_v1 = vmax.f32 %v393_v62, 0.0  ;;  %v676_v2 = vpop.f32.mrb[7].mxu0 }
 0x2c0   :  { %v399_v3 = vpack.c.bf16 %v398_v1, %v398_v1 }
 0x2c2   :  { %400 = vst [vmem:[#allocation2] sm:$0xf] %v399_v3 }
 0x2c9   :  { %v401_v5 = vld [vmem:[#allocation2] sm:$0xf] }
 0x2ca   :  { %694 = vmatmul.mubr.bf16.vlgmr.msra.gmra.mrb[4].mxu1 %v401_v5 }
 0x39d   :  { %v507_v4 = vpop.f32.mrb[4].mxu1 }
 0x39e   :  { %v508_v7 = vadd.f32 %v572_v6, %v507_v4  ;;  %v695_v8 = vpop.f32.mrb[5].mxu1 }
 0x39f   :  { %v510_v9 = vpop.f32.mrb[6].mxu1 }
 0x3a0   :  { %513 = vst [vmem:[#allocation8] sm:$0xff] %v508_v7  ;;  %v696_v10 = vpop.f32.mrb[7].mxu1 }
 0x3a1   :  { %743 = shalt.err (!%p740_p4)
}
 0x3a2   :  { %s744_s5 = scalar_lea.hbm %s979_s8, 128 }
 0x3a3   :  { %p745_p5 = scmp.ne.s32.totalorder %s979_s8, %s744_s5  ;;  %p748_p6 = scmp.lt.u32.totalorder %s744_s5, %s979_s8 }
 0x3a5   :  { %p750_p7 = pnand %p748_p6, %p745_p5 }
 0x3a7   :  { %753 = shalt.err (!%p750_p7)
}
 0x3a8   :  { %523 = dma.vmem_to_hbm [thread:$0]  %s521_s26, 128, %s979_s8, [#allocation9]  }
 0x3a9   :  { %754 = dma.done.wait [#allocation9], 128  }
 0x3aa   :  { %755 = vsyncadd [#allocation9], 4294967168 }
 0x3ab   :  { %527 = vsyncpa [#allocation9], 1 }

</bundles_post_ra>
